<compile_context>
chip_gen: v7x
topology: tpu7x:2x2x1
jax: 0.10.0
libtpu: 0.0.40
codegen_flags: <defaults>
</compile_context>

<pallas_src>
import jax
import jax.numpy as jnp
from jax.experimental import pallas as pl
from jax.experimental.pallas import tpu as pltpu


def _round_up(x, m):
    return ((x + m - 1) // m) * m


def _softplus(x):
    # Numerically-stable softplus, matches torch.nn.Softplus (beta=1).
    return jnp.maximum(x, 0.0) + jnp.log1p(jnp.exp(-jnp.abs(x)))


def spectral_ffn_kernel(z_ref, w1_ref, b1_ref, w2_ref, b2_ref, s_ref, o_ref):
    # Hidden layer: Linear + bias + ReLU (MXU matmul, f32 accumulation).
    h = jnp.dot(z_ref[...], w1_ref[...], preferred_element_type=jnp.float32)
    h = jnp.maximum(h + b1_ref[...], 0.0)

    # Output layer: Linear + bias (cast activations to the weight dtype so a
    # bf16 kernel keeps bf16 MXU operands; accumulation stays f32).
    y = jnp.dot(h.astype(w2_ref.dtype), w2_ref[...],
                preferred_element_type=jnp.float32)
    y = y + b2_ref[...]

    # Spectral activation applied twice (once inside the ffn Sequential, once
    # explicitly in SpectralFFN.forward) — reproduced exactly.
    y = _softplus(_softplus(y))

    # Per-(original)-row normalization: s_ref is a block-diagonal ones matrix,
    # so denom[r, c] = sum of y[r, :] over the lane-group containing lane c.
    # This uses the (otherwise idle) MXU instead of an XLU cross-lane reduce
    # and keeps the result lane-dense.
    denom = jnp.dot(y, s_ref[...], preferred_element_type=jnp.float32)

    # approx reciprocal lowers to the EUP slot; one Newton-Raphson refinement
    # restores ~f32 accuracy (denom > 0 since softplus > 0).
    inv = pl.reciprocal(denom, approx=True)
    inv = inv * (2.0 - denom * inv)
    o_ref[...] = (y * inv).astype(o_ref.dtype)


def spectral_ffn_forward(Z, W1, b1, W2, b2, *, max_block_rows=4096, use_bf16=None):
    """Z: (N, D_in). W1: (D_in, H), b1: (1, H), W2: (H, T), b2: (1, T) -> (N, T)."""
    N, D_in = Z.shape
    H = W1.shape[1]
    T = W2.shape[1]

    if use_bf16 is None:
        use_bf16 = (Z.dtype == jnp.bfloat16)   # only go bf16 if Z is already bf16
    compute_dtype = jnp.bfloat16 if use_bf16 else jnp.float32
    if Z.dtype != compute_dtype:
        # NOTE: this cast is a full HBM read+write of Z; avoid by producing Z
        # in compute_dtype upstream.
        Z = Z.astype(compute_dtype)
    W1 = W1.astype(compute_dtype)
    W2 = W2.astype(compute_dtype)
    b1 = b1.astype(jnp.float32).reshape(1, H)
    b2 = b2.astype(jnp.float32).reshape(1, T)

    # Lane-dense repack: fold G=8 batch rows into lanes so the epilogue and the
    # store run at full 128-lane occupancy (T=16 unpacked uses only 16/128).
    G = 8 if (N >= 8 and N % 8 == 0) else 1
    M = N // G                                  # packed row count
    Zp = Z.reshape(M, G * D_in)                 # row-major contiguous -> free reshape
    eye = jnp.eye(G, dtype=compute_dtype)
    W1p = jnp.kron(eye, W1)                     # (G*D_in, G*H) block-diagonal
    W2p = jnp.kron(eye, W2)                     # (G*H,  G*T)
    b1p = jnp.tile(b1, (1, G))                  # (1, G*H)
    b2p = jnp.tile(b2, (1, G))                  # (1, G*T)
    S = jnp.kron(jnp.eye(G, dtype=jnp.float32),
                 jnp.ones((T, T), jnp.float32))  # (G*T, G*T) per-group row-sum matrix

    # Tile selection: sized by HBM roofline (tiles here are <= ~2 MiB, an order
    # of magnitude under every generation's scoped VMEM).  Guarantee >= ~4 grid
    # steps for moderate N (megacore on v7x + DMA/compute overlap).
    max_block_m = max(8, max_block_rows // G)
    if M <= 8:
        block_m = M
    else:
        block_m = min(max_block_m, _round_up(pl.cdiv(M, 4), 8))
        block_m = min(block_m, _round_up(M, 8))
    grid = (pl.cdiv(M, block_m),)               # partial last block handled by Mosaic

    out = pl.pallas_call(
        spectral_ffn_kernel,
        out_shape=jax.ShapeDtypeStruct((M, G * T), jnp.float32),
        grid_spec=pltpu.PrefetchScalarGridSpec(
            num_scalar_prefetch=0,
            grid=grid,
            in_specs=[
                pl.BlockSpec((block_m, G * D_in), lambda i: (i, 0)),   # Z tile over batch
                pl.BlockSpec((G * D_in, G * H), lambda i: (0, 0)),     # W1' (resident)
                pl.BlockSpec((1, G * H), lambda i: (0, 0)),            # b1' (resident)
                pl.BlockSpec((G * H, G * T), lambda i: (0, 0)),        # W2' (resident)
                pl.BlockSpec((1, G * T), lambda i: (0, 0)),            # b2' (resident)
                pl.BlockSpec((G * T, G * T), lambda i: (0, 0)),        # row-sum matrix
            ],
            out_specs=pl.BlockSpec((block_m, G * T), lambda i: (i, 0)),
        ),
        compiler_params=pltpu.CompilerParams(
            dimension_semantics=("parallel",),   # batch axis -> megacore sharding
        ),
    )(Zp, W1p, b1p, W2p, b2p, S)

    return out.reshape(N, T)


def _reference(Z, W1, b1, W2, b2):
    h = jnp.maximum(Z.astype(jnp.float32) @ W1 + b1, 0.0)
    y = h @ W2 + b2
    y = jax.nn.softplus(jax.nn.softplus(y))
    return y / jnp.sum(y, axis=1, keepdims=True)


if __name__ == "__main__":
    # Small shapes consistent with the module:
    #   batch N = 16, input_dim = 32, hidden_dim = 64, n_tasks = 16 (n_targets = 1)
    N, D_in, H, T = 16, 32, 64, 16

    key = jax.random.PRNGKey(0)
    k_z, k_w1, k_b1, k_w2, k_b2, k_big, k_odd = jax.random.split(key, 7)

    Z = jax.random.normal(k_z, (N, D_in), dtype=jnp.float32)
    W1 = jax.random.normal(k_w1, (D_in, H), dtype=jnp.float32) * (1.0 / D_in) ** 0.5
    b1 = jax.random.normal(k_b1, (1, H), dtype=jnp.float32) * 0.01
    W2 = jax.random.normal(k_w2, (H, T), dtype=jnp.float32) * (1.0 / H) ** 0.5
    b2 = jax.random.normal(k_b2, (1, T), dtype=jnp.float32) * 0.01

    # 1) Small batch (N % 8 == 0 -> lane-packed path, single grid step), f32.
    out = spectral_ffn_forward(Z, W1, b1, W2, b2)
    out = jax.block_until_ready(out)
    ref = _reference(Z, W1, b1, W2, b2)
    assert out.shape == (N, T)
    assert jnp.allclose(out, ref, atol=1e-5, rtol=1e-5), "f32 mismatch vs reference"
    assert jnp.allclose(jnp.sum(out, axis=1), 1.0, atol=1e-5)

    # 2) Larger batch: lane-packed, multi-step parallel grid, pad-free cdiv grid.
    N_big = 1000
    Z_big = jax.random.normal(k_big, (N_big, D_in), dtype=jnp.float32)
    out_big = spectral_ffn_forward(Z_big, W1, b1, W2, b2)
    out_big = jax.block_until_ready(out_big)
    ref_big = _reference(Z_big, W1, b1, W2, b2)
    assert out_big.shape == (N_big, T)
    assert jnp.allclose(out_big, ref_big, atol=1e-5, rtol=1e-5), "packed mismatch"

    # 3) N not a multiple of 8 -> unpacked fallback with a partial last block.
    N_odd = 37
    Z_odd = jax.random.normal(k_odd, (N_odd, D_in), dtype=jnp.float32)
    out_odd = spectral_ffn_forward(Z_odd, W1, b1, W2, b2)
    out_odd = jax.block_until_ready(out_odd)
    ref_odd = _reference(Z_odd, W1, b1, W2, b2)
    assert out_odd.shape == (N_odd, T)
    assert jnp.allclose(out_odd, ref_odd, atol=1e-5, rtol=1e-5), "fallback mismatch"

    # 4) bf16 operands / f32 accumulation (looser tolerance from bf16 inputs).
    out_bf16 = spectral_ffn_forward(Z, W1, b1, W2, b2, use_bf16=True)
    out_bf16 = jax.block_until_ready(out_bf16)
    assert jnp.allclose(out_bf16, ref, atol=3e-2, rtol=3e-2), "bf16 mismatch"
    assert jnp.allclose(jnp.sum(out_bf16, axis=1), 1.0, atol=1e-3)

    print("KERNEL_OK")
</pallas_src>

<mosaic_0001>
module attributes {stable_mosaic.version = 11 : i64} {
  func.func @spectral_ffn_kernel(%arg0: i32, %arg1: memref<2x256xf32, #tpu.memory_space<vmem>>, %arg2: memref<256x512xf32, #tpu.memory_space<vmem>>, %arg3: memref<1x512xf32, #tpu.memory_space<vmem>>, %arg4: memref<512x128xf32, #tpu.memory_space<vmem>>, %arg5: memref<1x128xf32, #tpu.memory_space<vmem>>, %arg6: memref<128x128xf32, #tpu.memory_space<vmem>>, %arg7: memref<2x128xf32, #tpu.memory_space<vmem>>) attributes {dimension_semantics = [#tpu.dimension_semantics<parallel>], iteration_bounds = array<i64: 1>, scalar_prefetch = 0 : i64, scratch_operands = 0 : i64, tpu.core_type = #tpu.core_type<tc>, window_params = [{transform_indices = @transform_0, window_bounds = array<i64: 2, 256>}, {pipeline_mode = #tpu.pipeline_mode<synchronous>, transform_indices = @transform_1, window_bounds = array<i64: 256, 512>}, {pipeline_mode = #tpu.pipeline_mode<synchronous>, transform_indices = @transform_2, window_bounds = array<i64: 1, 512>}, {pipeline_mode = #tpu.pipeline_mode<synchronous>, transform_indices = @transform_3, window_bounds = array<i64: 512, 128>}, {pipeline_mode = #tpu.pipeline_mode<synchronous>, transform_indices = @transform_4, window_bounds = array<i64: 1, 128>}, {pipeline_mode = #tpu.pipeline_mode<synchronous>, transform_indices = @transform_5, window_bounds = array<i64: 128, 128>}, {transform_indices = @transform_6, window_bounds = array<i64: 2, 128>}]} {
    %c0 = arith.constant 0 : index
    %c0_0 = arith.constant 0 : index
    %0 = vector.load %arg1[%c0, %c0_0] : memref<2x256xf32, #tpu.memory_space<vmem>>, vector<2x256xf32>
    %c0_1 = arith.constant 0 : index
    %c0_2 = arith.constant 0 : index
    %1 = vector.load %arg2[%c0_1, %c0_2] : memref<256x512xf32, #tpu.memory_space<vmem>>, vector<256x512xf32>
    %cst = arith.constant dense<0.000000e+00> : vector<2x512xf32>
    %2 = tpu.matmul %0, %1, %cst {dimension_numbers = #tpu.dot_dimension_numbers<[1], [0], [0], [1], [0, 0, 1, 1], [], []>} : vector<2x256xf32>, vector<256x512xf32>, vector<2x512xf32> -> vector<2x512xf32>
    %c0_3 = arith.constant 0 : index
    %c0_4 = arith.constant 0 : index
    %3 = vector.load %arg3[%c0_3, %c0_4] : memref<1x512xf32, #tpu.memory_space<vmem>>, vector<1x512xf32>
    %4 = vector.broadcast %3 : vector<1x512xf32> to vector<2x512xf32>
    %5 = arith.addf %2, %4 : vector<2x512xf32>
    %cst_5 = arith.constant 0.000000e+00 : f32
    %6 = vector.broadcast %cst_5 : f32 to vector<2x512xf32>
    %7 = arith.maximumf %5, %6 : vector<2x512xf32>
    %c0_6 = arith.constant 0 : index
    %c0_7 = arith.constant 0 : index
    %8 = vector.load %arg4[%c0_6, %c0_7] : memref<512x128xf32, #tpu.memory_space<vmem>>, vector<512x128xf32>
    %cst_8 = arith.constant dense<0.000000e+00> : vector<2x128xf32>
    %9 = tpu.matmul %7, %8, %cst_8 {dimension_numbers = #tpu.dot_dimension_numbers<[1], [0], [0], [1], [0, 0, 1, 1], [], []>} : vector<2x512xf32>, vector<512x128xf32>, vector<2x128xf32> -> vector<2x128xf32>
    %c0_9 = arith.constant 0 : index
    %c0_10 = arith.constant 0 : index
    %10 = vector.load %arg5[%c0_9, %c0_10] : memref<1x128xf32, #tpu.memory_space<vmem>>, vector<1x128xf32>
    %11 = vector.broadcast %10 : vector<1x128xf32> to vector<2x128xf32>
    %12 = arith.addf %9, %11 : vector<2x128xf32>
    %cst_11 = arith.constant 0.000000e+00 : f32
    %13 = vector.broadcast %cst_11 : f32 to vector<2x128xf32>
    %14 = arith.maximumf %12, %13 : vector<2x128xf32>
    %15 = math.absf %12 : vector<2x128xf32>
    %cst_12 = arith.constant 0.000000e+00 : f32
    %16 = vector.broadcast %cst_12 : f32 to vector<2x128xf32>
    %17 = arith.subf %16, %15 : vector<2x128xf32>
    %18 = math.exp %17 : vector<2x128xf32>
    %19 = math.log1p %18 : vector<2x128xf32>
    %20 = arith.addf %14, %19 : vector<2x128xf32>
    %cst_13 = arith.constant 0.000000e+00 : f32
    %21 = vector.broadcast %cst_13 : f32 to vector<2x128xf32>
    %22 = arith.maximumf %20, %21 : vector<2x128xf32>
    %23 = math.absf %20 : vector<2x128xf32>
    %cst_14 = arith.constant 0.000000e+00 : f32
    %24 = vector.broadcast %cst_14 : f32 to vector<2x128xf32>
    %25 = arith.subf %24, %23 : vector<2x128xf32>
    %26 = math.exp %25 : vector<2x128xf32>
    %27 = math.log1p %26 : vector<2x128xf32>
    %28 = arith.addf %22, %27 : vector<2x128xf32>
    %c0_15 = arith.constant 0 : index
    %c0_16 = arith.constant 0 : index
    %29 = vector.load %arg6[%c0_15, %c0_16] : memref<128x128xf32, #tpu.memory_space<vmem>>, vector<128x128xf32>
    %cst_17 = arith.constant dense<0.000000e+00> : vector<2x128xf32>
    %30 = tpu.matmul %28, %29, %cst_17 {dimension_numbers = #tpu.dot_dimension_numbers<[1], [0], [0], [1], [0, 0, 1, 1], [], []>} : vector<2x128xf32>, vector<128x128xf32>, vector<2x128xf32> -> vector<2x128xf32>
    %31 = tpu.reciprocal %30 {approx = true} : vector<2x128xf32> -> vector<2x128xf32>
    %32 = arith.mulf %30, %31 : vector<2x128xf32>
    %cst_18 = arith.constant 2.000000e+00 : f32
    %33 = vector.broadcast %cst_18 : f32 to vector<2x128xf32>
    %34 = arith.subf %33, %32 : vector<2x128xf32>
    %35 = arith.mulf %31, %34 : vector<2x128xf32>
    %36 = arith.mulf %28, %35 : vector<2x128xf32>
    %c0_19 = arith.constant 0 : index
    %c0_20 = arith.constant 0 : index
    %37 = vector.load %arg7[%c0_19, %c0_20] : memref<2x128xf32, #tpu.memory_space<vmem>>, vector<2x128xf32>
    tpu.vector_store %arg7[%c0_19, %c0_20], %36 {strides = array<i32>} : memref<2x128xf32, #tpu.memory_space<vmem>>, vector<2x128xf32>,
    return
  }
  func.func @transform_0(%arg0: i32) -> (i32, i32) {
    %c0_i32 = arith.constant 0 : i32
    %c0_i32_0 = arith.constant 0 : i32
    return %arg0, %c0_i32 : i32, i32
  }
  func.func @transform_1(%arg0: i32) -> (i32, i32) {
    %c0_i32 = arith.constant 0 : i32
    %c0_i32_0 = arith.constant 0 : i32
    %c0_i32_1 = arith.constant 0 : i32
    return %c0_i32, %c0_i32_0 : i32, i32
  }
  func.func @transform_2(%arg0: i32) -> (i32, i32) {
    %c0_i32 = arith.constant 0 : i32
    %c0_i32_0 = arith.constant 0 : i32
    %c0_i32_1 = arith.constant 0 : i32
    return %c0_i32, %c0_i32_0 : i32, i32
  }
  func.func @transform_3(%arg0: i32) -> (i32, i32) {
    %c0_i32 = arith.constant 0 : i32
    %c0_i32_0 = arith.constant 0 : i32
    %c0_i32_1 = arith.constant 0 : i32
    return %c0_i32, %c0_i32_0 : i32, i32
  }
  func.func @transform_4(%arg0: i32) -> (i32, i32) {
    %c0_i32 = arith.constant 0 : i32
    %c0_i32_0 = arith.constant 0 : i32
    %c0_i32_1 = arith.constant 0 : i32
    return %c0_i32, %c0_i32_0 : i32, i32
  }
  func.func @transform_5(%arg0: i32) -> (i32, i32) {
    %c0_i32 = arith.constant 0 : i32
    %c0_i32_0 = arith.constant 0 : i32
    %c0_i32_1 = arith.constant 0 : i32
    return %c0_i32, %c0_i32_0 : i32, i32
  }
  func.func @transform_6(%arg0: i32) -> (i32, i32) {
    %c0_i32 = arith.constant 0 : i32
    %c0_i32_0 = arith.constant 0 : i32
    return %arg0, %c0_i32 : i32, i32
  }
}

</mosaic_0001>

<bundles_post_ra>
// kernel: tpu_custom_call.1
= control target key start
LH: loop header
LB: loop body
LE: loop exit
PB: predicated region body
PF: predicated region fallthrough
CT: control target
= control target key end

     0   :  { %11 = vsyncpa [#allocation3], 0  ;;  %s1334_s0 = inlined_call_operand.hbm [shape: f32[2,256], index: 0, kind: input, shape index: {}]   ;;  %s1335_s1 = inlined_call_operand.hbm [shape: f32[256,512], index: 1, kind: input, shape index: {}]   ;;  %s1336_s2 = inlined_call_operand.vmem [shape: f32[1,512], index: 2, kind: input, shape index: {}]   ;;  %s1337_s3 = inlined_call_operand.hbm [shape: f32[512,128], index: 3, kind: input, shape index: {}]   ;;  %s1338_s4 = inlined_call_operand.vmem [shape: f32[1,128], index: 4, kind: input, shape index: {}]   ;;  %s1339_s5 = inlined_call_operand.hbm [shape: f32[128,128], index: 5, kind: input, shape index: {}]   ;;  %s1340_s6 = inlined_call_operand.hbm [shape: f32[2,128], index: 6, kind: output, shape index: {}]  }
   0x1   :  { %12 = vsyncpa [#allocation6], 0 }
   0x2   :  { %13 = vsyncpa [#allocation9], 0 }
   0x3   :  { %14 = vsyncpa [#allocation4], 0  ;;  %s1215_s21 = smov [#allocation5]   ;;  %s1097_s25 = scalar_lea.hbm %s1335_s1, 16384 }
   0x4   :  { %s30_s22 = sshll.u32 %s1215_s21, 4  ;;  %p1098_p0 = scmp.ne.s32.totalorder %s1335_s1, %s1097_s25  ;;  %s31_s22 = int_to_ptr.vmem [resolvable:$true] %s30_s22 }
   0x5   :  { %p1101_p1 = scmp.lt.u32.totalorder %s1097_s25, %s1335_s1 }
   0x7   :  { %p1103_p2 = pnand %p1101_p1, %p1098_p0 }
   0x9   :  { %1106 = shalt.err (!%p1103_p2)
}
   0xa   :  { %s1107_s30 = scalar_lea.vmem %s31_s22, 16384  ;;  %p1112_p4 = scmp.lt.s32.totalorder %s31_s22, %s31_s22 }
   0xb   :  { %p1108_p3 = scmp.ne.s32.totalorder %s31_s22, %s1107_s30  ;;  %p1113_p5 = scmp.lt.s32.totalorder %s1107_s30, %s1107_s30 }
   0xd   :  { %p1114_p6 = por %p1113_p5, %p1112_p4 }
   0xf   :  { %p1115_p7 = pnand %p1114_p6, %p1108_p3 }
  0x11   :  { %1118 = shalt.err (!%p1115_p7)
}
  0x12   :  { %s1216_s7 = smov 512   ;;  %s1217_s8 = smov 32  }
  0x13   :  { %36 = dma.hbm_to_vmem [thread:$0]  %s1335_s1, 16384, %s31_s22, [#allocation6], %s1216_s7, %s1216_s7, %s1217_s8  }
  0x14   :  { %s1218_s11 = smov [#allocation2]   ;;  %s1219_s13 = smov [#allocation7]  }
  0x15   :  { %s21_s12 = sshll.u32 %s1218_s11, 4  ;;  %s44_s14 = sshll.u32 %s1219_s13, 4  ;;  %s22_s12 = int_to_ptr.vmem [resolvable:$true] %s21_s12  ;;  %s45_s14 = int_to_ptr.vmem [resolvable:$true] %s44_s14 }
  0x16   :  { %s1119_s17 = scalar_lea.hbm %s1334_s0, 64 }
  0x17   :  { %p1120_p8 = scmp.ne.s32.totalorder %s1334_s0, %s1119_s17  ;;  %p1123_p9 = scmp.lt.u32.totalorder %s1119_s17, %s1334_s0 }
  0x19   :  { %p1125_p10 = pnand %p1123_p9, %p1120_p8 }
  0x1b   :  { %1128 = shalt.err (!%p1125_p10)
}
  0x1c   :  { %s1129_s1 = scalar_lea.vmem %s22_s12, 64  ;;  %p1134_p12 = scmp.lt.s32.totalorder %s22_s12, %s22_s12 }
  0x1d   :  { %p1130_p11 = scmp.ne.s32.totalorder %s22_s12, %s1129_s1  ;;  %p1135_p13 = scmp.lt.s32.totalorder %s1129_s1, %s1129_s1 }
  0x1f   :  { %p1136_p0 = por %p1135_p13, %p1134_p12 }
  0x21   :  { %p1137_p1 = pnand %p1136_p0, %p1130_p11 }
  0x23   :  { %1140 = shalt.err (!%p1137_p1)
}
  0x24   :  { %24 = dma.hbm_to_vmem [thread:$0]  %s1334_s0, 64, %s22_s12, [#allocation3]  }
  0x25   :  { %s1141_s26 = scalar_lea.hbm %s1337_s3, 8192 }
  0x26   :  { %p1142_p2 = scmp.ne.s32.totalorder %s1337_s3, %s1141_s26  ;;  %p1145_p3 = scmp.lt.u32.totalorder %s1141_s26, %s1337_s3 }
  0x28   :  { %p1147_p4 = pnand %p1145_p3, %p1142_p2 }
  0x2a   :  { %1150 = shalt.err (!%p1147_p4)
}
  0x2b   :  { %s1151_s7 = scalar_lea.vmem %s45_s14, 8192  ;;  %p1156_p6 = scmp.lt.s32.totalorder %s45_s14, %s45_s14 }
  0x2c   :  { %p1152_p5 = scmp.ne.s32.totalorder %s45_s14, %s1151_s7  ;;  %p1157_p7 = scmp.lt.s32.totalorder %s1151_s7, %s1151_s7 }
  0x2e   :  { %p1158_p8 = por %p1157_p7, %p1156_p6 }
  0x30   :  { %p1159_p9 = pnand %p1158_p8, %p1152_p5 }
  0x32   :  { %1162 = shalt.err (!%p1159_p9)
}
  0x33   :  { %s1220_s0 = smov 128   ;;  %s1221_s8 = smov 8  }
  0x34   :  { %50 = dma.hbm_to_vmem [thread:$0]  %s1337_s3, 8192, %s45_s14, [#allocation6], %s1220_s0, %s1220_s0, %s1221_s8  }
  0x35   :  { %s1222_s11 = smov [#allocation8]   ;;  %s1163_s16 = scalar_lea.hbm %s1339_s5, 2048 }
  0x36   :  { %s58_s12 = sshll.u32 %s1222_s11, 4  ;;  %p1164_p10 = scmp.ne.s32.totalorder %s1339_s5, %s1163_s16  ;;  %s59_s12 = int_to_ptr.vmem [resolvable:$true] %s58_s12 }
  0x37   :  { %p1167_p11 = scmp.lt.u32.totalorder %s1163_s16, %s1339_s5 }
  0x39   :  { %p1169_p12 = pnand %p1167_p11, %p1164_p10 }
  0x3b   :  { %1172 = shalt.err (!%p1169_p12)
}
  0x3c   :  { %s1173_s21 = scalar_lea.vmem %s59_s12, 2048  ;;  %p1178_p0 = scmp.lt.s32.totalorder %s59_s12, %s59_s12 }
  0x3d   :  { %p1174_p13 = scmp.ne.s32.totalorder %s59_s12, %s1173_s21  ;;  %p1179_p1 = scmp.lt.s32.totalorder %s1173_s21, %s1173_s21 }
  0x3f   :  { %p1180_p2 = por %p1179_p1, %p1178_p0 }
  0x41   :  { %p1181_p3 = pnand %p1180_p2, %p1174_p13 }
  0x43   :  { %1184 = shalt.err (!%p1181_p3)
}
  0x44   :  { %64 = dma.hbm_to_vmem [thread:$0]  %s1339_s5, 2048, %s59_s12, [#allocation9], %s1220_s0, %s1220_s0, %s1221_s8  }
  0x45   :  { %1207 = dma.done.wait [#allocation3], 64  }
  0x46   :  { %1208 = vsyncadd [#allocation3], 4294967232 }
  0x47   :  { %1209 = dma.done.wait [#allocation6], 24576  }
  0x48   :  { %1210 = vsyncadd [#allocation6], 4294942720 }
  0x49   :  { %1211 = dma.done.wait [#allocation9], 2048  }
  0x4a   :  { %1212 = vsyncadd [#allocation9], 4294965248  ;;  %v79_v0 = vld [vmem:[#allocation5 + $0x8] sm:$0xff]  ;;  %v81_v2 = vld [vmem:[#allocation5 + $0x18] sm:$0xff]  ;;  %vm1224_vm0 = vmmov 0  }
  0x4b   :  { %v83_v1 = vld [vmem:[#allocation5 + $0x28] sm:$0xff]  ;;  %v85_v4 = vld [vmem:[#allocation5 + $0x38] sm:$0xff]  ;;  %v78_v5 = vld [vmem:[#allocation5] sm:$0xff] }
  0x4c   :  { %v859_v3 = vpack.c.bf16 %v83_v1, %v79_v0  ;;  %v82_v6 = vld [vmem:[#allocation5 + $0x20] sm:$0xff]  ;;  %v923_v7 = vpack.c.bf16 %v85_v4, %v81_v2  ;;  %v80_v9 = vld [vmem:[#allocation5 + $0x10] sm:$0xff]  ;;  %v87_v11 = vld [vmem:[#allocation5 + $0x48] sm:$0xff] }
  0x4d   :  { %v861_v8 = vpack.c.bf16 %v82_v6, %v78_v5  ;;  %v84_v10 = vld [vmem:[#allocation5 + $0x30] sm:$0xff]  ;;  %v91_v13 = vld [vmem:[#allocation5 + $0x68] sm:$0xff]  ;;  %v89_v14 = vld [vmem:[#allocation5 + $0x58] sm:$0xff] }
  0x4e   :  { %860 = vmatprep.subr.bf16.mxu0 %v859_v3  ;;  %v925_v12 = vpack.c.bf16 %v84_v10, %v80_v9  ;;  %v93_v15 = vld [vmem:[#allocation5 + $0x78] sm:$0xff]  ;;  %924 = vmatprep.subr.bf16.mxu1 %v923_v7  ;;  %v863_v16 = vpack.c.bf16 %v91_v13, %v87_v11  ;;  %v86_v18 = vld [vmem:[#allocation5 + $0x40] sm:$0xff]  ;;  %v88_v20 = vld [vmem:[#allocation5 + $0x50] sm:$0xff] }
  0x4f   :  { %862 = vmatpush1.bf16.msra.mxu0 %v861_v8  ;;  %v927_v17 = vpack.c.bf16 %v93_v15, %v89_v14  ;;  %v90_v19 = vld [vmem:[#allocation5 + $0x60] sm:$0xff]  ;;  %v92_v22 = vld [vmem:[#allocation5 + $0x70] sm:$0xff]  ;;  %v95_v23 = vld [vmem:[#allocation5 + $0x88] sm:$0xff] }
  0x50   :  { %926 = vmatpush1.bf16.msra.mxu1 %v925_v12  ;;  %v865_v21 = vpack.c.bf16 %v90_v19, %v86_v18  ;;  %v99_v24 = vld [vmem:[#allocation5 + $0xa8] sm:$0xff]  ;;  %864 = vmatprep.subr.bf16.mxu0 %v863_v16  ;;  %v929_v25 = vpack.c.bf16 %v92_v22, %v88_v20  ;;  %v97_v27 = vld [vmem:[#allocation5 + $0x98] sm:$0xff]  ;;  %v94_v29 = vld [vmem:[#allocation5 + $0x80] sm:$0xff] }
  0x51   :  { %928 = vmatprep.subr.bf16.mxu1 %v927_v17  ;;  %v867_v26 = vpack.c.bf16 %v99_v24, %v95_v23  ;;  %v101_v28 = vld [vmem:[#allocation5 + $0xb8] sm:$0xff]  ;;  %v98_v31 = vld [vmem:[#allocation5 + $0xa0] sm:$0xff]  ;;  %v96_v32 = vld [vmem:[#allocation5 + $0x90] sm:$0xff] }
  0x52   :  { %v931_v30 = vpack.c.bf16 %v101_v28, %v97_v27  ;;  %v100_v33 = vld [vmem:[#allocation5 + $0xb0] sm:$0xff]  ;;  %v869_v34 = vpack.c.bf16 %v98_v31, %v94_v29  ;;  %v103_v35 = vld [vmem:[#allocation5 + $0xc8] sm:$0xff]  ;;  %v105_v37 = vld [vmem:[#allocation5 + $0xd8] sm:$0xff] }
  0x53   :  { %866 = vmatpush1.bf16.msra.mxu0 %v865_v21  ;;  %v107_v36 = vld [vmem:[#allocation5 + $0xe8] sm:$0xff]  ;;  %v933_v38 = vpack.c.bf16 %v100_v33, %v96_v32  ;;  %v109_v40 = vld [vmem:[#allocation5 + $0xf8] sm:$0xff]  ;;  %v102_v41 = vld [vmem:[#allocation5 + $0xc0] sm:$0xff] }
  0x54   :  { %930 = vmatpush1.bf16.msra.mxu1 %v929_v25  ;;  %868 = vmatprep.subr.bf16.mxu0 %v867_v26  ;;  %v871_v39 = vpack.c.bf16 %v107_v36, %v103_v35  ;;  %v106_v42 = vld [vmem:[#allocation5 + $0xe0] sm:$0xff]  ;;  %v935_v43 = vpack.c.bf16 %v109_v40, %v105_v37  ;;  %v104_v44 = vld [vmem:[#allocation5 + $0xd0] sm:$0xff]  ;;  %v111_v46 = vld [vmem:[#allocation5 + $0x108] sm:$0xff] }
  0x55   :  { %932 = vmatprep.subr.bf16.mxu1 %v931_v30  ;;  %v108_v45 = vld [vmem:[#allocation5 + $0xf0] sm:$0xff]  ;;  %v115_v47 = vld [vmem:[#allocation5 + $0x128] sm:$0xff]  ;;  %v113_v48 = vld [vmem:[#allocation5 + $0x118] sm:$0xff]  ;;  %v873_v50 = vpack.c.bf16 %v106_v42, %v102_v41 }
  0x56   :  { %v117_v49 = vld [vmem:[#allocation5 + $0x138] sm:$0xff]  ;;  %v937_v51 = vpack.c.bf16 %v108_v45, %v104_v44  ;;  %v875_v52 = vpack.c.bf16 %v115_v47, %v111_v46  ;;  %v110_v53 = vld [vmem:[#allocation5 + $0x100] sm:$0xff]  ;;  %v112_v55 = vld [vmem:[#allocation5 + $0x110] sm:$0xff] }
  0x57   :  { %870 = vmatpush1.bf16.msra.mxu0 %v869_v34  ;;  %v114_v54 = vld [vmem:[#allocation5 + $0x120] sm:$0xff]  ;;  %v939_v56 = vpack.c.bf16 %v117_v49, %v113_v48  ;;  %v116_v57 = vld [vmem:[#allocation5 + $0x130] sm:$0xff]  ;;  %v119_v58 = vld [vmem:[#allocation5 + $0x148] sm:$0xff] }
  0x58   :  { %934 = vmatpush1.bf16.msra.mxu1 %v933_v38  ;;  %872 = vmatprep.subr.bf16.mxu0 %v871_v39  ;;  %v123_v59 = vld [vmem:[#allocation5 + $0x168] sm:$0xff]  ;;  %v121_v60 = vld [vmem:[#allocation5 + $0x158] sm:$0xff]  ;;  %v877_v62 = vpack.c.bf16 %v114_v54, %v110_v53  ;;  %v941_v63 = vpack.c.bf16 %v116_v57, %v112_v55  ;;  %v118_v1 = vld [vmem:[#allocation5 + $0x140] sm:$0xff] }
  0x59   :  { %936 = vmatprep.subr.bf16.mxu1 %v935_v43  ;;  %v125_v61 = vld [vmem:[#allocation5 + $0x178] sm:$0xff]  ;;  %v879_v0 = vpack.c.bf16 %v123_v59, %v119_v58  ;;  %v122_v2 = vld [vmem:[#allocation5 + $0x160] sm:$0xff]  ;;  %v120_v3 = vld [vmem:[#allocation5 + $0x150] sm:$0xff] }
  0x5a   :  { %v943_v4 = vpack.c.bf16 %v125_v61, %v121_v60  ;;  %v124_v5 = vld [vmem:[#allocation5 + $0x170] sm:$0xff]  ;;  %v127_v6 = vld [vmem:[#allocation5 + $0x188] sm:$0xff]  ;;  %v129_v8 = vld [vmem:[#allocation5 + $0x198] sm:$0xff]  ;;  %v881_v10 = vpack.c.bf16 %v122_v2, %v118_v1 }
  0x5b   :  { %874 = vmatpush1.bf16.msra.mxu0 %v873_v50  ;;  %v131_v7 = vld [vmem:[#allocation5 + $0x1a8] sm:$0xff]  ;;  %v133_v9 = vld [vmem:[#allocation5 + $0x1b8] sm:$0xff]  ;;  %v945_v11 = vpack.c.bf16 %v124_v5, %v120_v3  ;;  %v126_v13 = vld [vmem:[#allocation5 + $0x180] sm:$0xff] }
  0x5c   :  { %938 = vmatpush1.bf16.msra.mxu1 %v937_v51  ;;  %876 = vmatprep.subr.bf16.mxu0 %v875_v52  ;;  %v883_v12 = vpack.c.bf16 %v131_v7, %v127_v6  ;;  %v130_v14 = vld [vmem:[#allocation5 + $0x1a0] sm:$0xff]  ;;  %v128_v15 = vld [vmem:[#allocation5 + $0x190] sm:$0xff]  ;;  %v947_v16 = vpack.c.bf16 %v133_v9, %v129_v8  ;;  %v135_v18 = vld [vmem:[#allocation5 + $0x1c8] sm:$0xff] }
  0x5d   :  { %940 = vmatprep.subr.bf16.mxu1 %v939_v56  ;;  %v132_v17 = vld [vmem:[#allocation5 + $0x1b0] sm:$0xff]  ;;  %v139_v19 = vld [vmem:[#allocation5 + $0x1e8] sm:$0xff]  ;;  %v137_v20 = vld [vmem:[#allocation5 + $0x1d8] sm:$0xff]  ;;  %v885_v22 = vpack.c.bf16 %v130_v14, %v126_v13 }
  0x5e   :  { %v141_v21 = vld [vmem:[#allocation5 + $0x1f8] sm:$0xff]  ;;  %v949_v23 = vpack.c.bf16 %v132_v17, %v128_v15  ;;  %v887_v24 = vpack.c.bf16 %v139_v19, %v135_v18  ;;  %v134_v25 = vld [vmem:[#allocation5 + $0x1c0] sm:$0xff]  ;;  %v136_v27 = vld [vmem:[#allocation5 + $0x1d0] sm:$0xff] }
  0x5f   :  { %878 = vmatpush1.bf16.msra.mxu0 %v877_v62  ;;  %v138_v26 = vld [vmem:[#allocation5 + $0x1e0] sm:$0xff]  ;;  %v951_v28 = vpack.c.bf16 %v141_v21, %v137_v20  ;;  %v140_v29 = vld [vmem:[#allocation5 + $0x1f0] sm:$0xff]  ;;  %v143_v30 = vld [vmem:[#allocation5 + $0x208] sm:$0xff] }
  0x60   :  { %942 = vmatpush1.bf16.msra.mxu1 %v941_v63  ;;  %880 = vmatprep.subr.bf16.mxu0 %v879_v0  ;;  %v147_v31 = vld [vmem:[#allocation5 + $0x228] sm:$0xff]  ;;  %v145_v32 = vld [vmem:[#allocation5 + $0x218] sm:$0xff]  ;;  %v889_v34 = vpack.c.bf16 %v138_v26, %v134_v25  ;;  %v953_v35 = vpack.c.bf16 %v140_v29, %v136_v27  ;;  %v142_v37 = vld [vmem:[#allocation5 + $0x200] sm:$0xff] }
  0x61   :  { %944 = vmatprep.subr.bf16.mxu1 %v943_v4  ;;  %v149_v33 = vld [vmem:[#allocation5 + $0x238] sm:$0xff]  ;;  %v891_v36 = vpack.c.bf16 %v147_v31, %v143_v30  ;;  %v146_v38 = vld [vmem:[#allocation5 + $0x220] sm:$0xff]  ;;  %v144_v39 = vld [vmem:[#allocation5 + $0x210] sm:$0xff] }
  0x62   :  { %v955_v40 = vpack.c.bf16 %v149_v33, %v145_v32  ;;  %v148_v41 = vld [vmem:[#allocation5 + $0x230] sm:$0xff]  ;;  %v151_v42 = vld [vmem:[#allocation5 + $0x248] sm:$0xff]  ;;  %v153_v44 = vld [vmem:[#allocation5 + $0x258] sm:$0xff]  ;;  %v893_v46 = vpack.c.bf16 %v146_v38, %v142_v37 }
  0x63   :  { %882 = vmatpush1.bf16.msra.mxu0 %v881_v10  ;;  %v155_v43 = vld [vmem:[#allocation5 + $0x268] sm:$0xff]  ;;  %v157_v45 = vld [vmem:[#allocation5 + $0x278] sm:$0xff]  ;;  %v957_v47 = vpack.c.bf16 %v148_v41, %v144_v39  ;;  %v150_v49 = vld [vmem:[#allocation5 + $0x240] sm:$0xff] }
  0x64   :  { %946 = vmatpush1.bf16.msra.mxu1 %v945_v11  ;;  %884 = vmatprep.subr.bf16.mxu0 %v883_v12  ;;  %v895_v48 = vpack.c.bf16 %v155_v43, %v151_v42  ;;  %v154_v50 = vld [vmem:[#allocation5 + $0x260] sm:$0xff]  ;;  %v152_v51 = vld [vmem:[#allocation5 + $0x250] sm:$0xff]  ;;  %v959_v52 = vpack.c.bf16 %v157_v45, %v153_v44  ;;  %v159_v54 = vld [vmem:[#allocation5 + $0x288] sm:$0xff] }
  0x65   :  { %948 = vmatprep.subr.bf16.mxu1 %v947_v16  ;;  %v156_v53 = vld [vmem:[#allocation5 + $0x270] sm:$0xff]  ;;  %v163_v55 = vld [vmem:[#allocation5 + $0x2a8] sm:$0xff]  ;;  %v161_v56 = vld [vmem:[#allocation5 + $0x298] sm:$0xff]  ;;  %v897_v58 = vpack.c.bf16 %v154_v50, %v150_v49 }
  0x66   :  { %v165_v57 = vld [vmem:[#allocation5 + $0x2b8] sm:$0xff]  ;;  %v961_v59 = vpack.c.bf16 %v156_v53, %v152_v51  ;;  %v899_v60 = vpack.c.bf16 %v163_v55, %v159_v54  ;;  %v158_v61 = vld [vmem:[#allocation5 + $0x280] sm:$0xff]  ;;  %v160_v63 = vld [vmem:[#allocation5 + $0x290] sm:$0xff] }
  0x67   :  { %886 = vmatpush1.bf16.msra.mxu0 %v885_v22  ;;  %v162_v62 = vld [vmem:[#allocation5 + $0x2a0] sm:$0xff]  ;;  %v963_v0 = vpack.c.bf16 %v165_v57, %v161_v56  ;;  %v164_v1 = vld [vmem:[#allocation5 + $0x2b0] sm:$0xff]  ;;  %v167_v2 = vld [vmem:[#allocation5 + $0x2c8] sm:$0xff] }
  0x68   :  { %950 = vmatpush1.bf16.msra.mxu1 %v949_v23  ;;  %888 = vmatprep.subr.bf16.mxu0 %v887_v24  ;;  %v171_v3 = vld [vmem:[#allocation5 + $0x2e8] sm:$0xff]  ;;  %v169_v4 = vld [vmem:[#allocation5 + $0x2d8] sm:$0xff]  ;;  %v901_v6 = vpack.c.bf16 %v162_v62, %v158_v61  ;;  %v166_v7 = vld [vmem:[#allocation5 + $0x2c0] sm:$0xff]  ;;  %v965_v8 = vpack.c.bf16 %v164_v1, %v160_v63 }
  0x69   :  { %952 = vmatprep.subr.bf16.mxu1 %v951_v28  ;;  %v173_v5 = vld [vmem:[#allocation5 + $0x2f8] sm:$0xff]  ;;  %v903_v9 = vpack.c.bf16 %v171_v3, %v167_v2  ;;  %v170_v10 = vld [vmem:[#allocation5 + $0x2e0] sm:$0xff]  ;;  %v168_v11 = vld [vmem:[#allocation5 + $0x2d0] sm:$0xff] }
  0x6a   :  { %v172_v12 = vld [vmem:[#allocation5 + $0x2f0] sm:$0xff]  ;;  %v967_v13 = vpack.c.bf16 %v173_v5, %v169_v4  ;;  %v175_v14 = vld [vmem:[#allocation5 + $0x308] sm:$0xff]  ;;  %v1310_v16 = vld.sshfl [vmem:[#allocation2] sm:$0x33 pattern:$0x76325410]  ;;  %v905_v20 = vpack.c.bf16 %v170_v10, %v166_v7 }
  0x6b   :  { %890 = vmatpush1.bf16.msra.mxu0 %v889_v34  ;;  %v179_v15 = vld [vmem:[#allocation5 + $0x328] sm:$0xff]  ;;  %v177_v17 = vld [vmem:[#allocation5 + $0x318] sm:$0xff]  ;;  %v236_v19 = vcombine.high %v1310_v16, %v1310_v16  ;;  %v969_v21 = vpack.c.bf16 %v172_v12, %v168_v11  ;;  %v174_v23 = vld [vmem:[#allocation5 + $0x300] sm:$0xff] }
  0x6c   :  { %954 = vmatpush1.bf16.msra.mxu1 %v953_v35  ;;  %892 = vmatprep.subr.bf16.mxu0 %v891_v36  ;;  %v181_v18 = vld [vmem:[#allocation5 + $0x338] sm:$0xff]  ;;  %v907_v22 = vpack.c.bf16 %v179_v15, %v175_v14  ;;  %v178_v24 = vld [vmem:[#allocation5 + $0x320] sm:$0xff]  ;;  %v176_v25 = vld [vmem:[#allocation5 + $0x310] sm:$0xff] }
  0x6d   :  { %956 = vmatprep.subr.bf16.mxu1 %v955_v40  ;;  %v971_v26 = vpack.c.bf16 %v181_v18, %v177_v17  ;;  %v180_v27 = vld [vmem:[#allocation5 + $0x330] sm:$0xff]  ;;  %v183_v28 = vld [vmem:[#allocation5 + $0x348] sm:$0xff]  ;;  %303 = vmatprep.mubr.f32.mxu0 %v236_v19  ;;  %v185_v30 = vld [vmem:[#allocation5 + $0x358] sm:$0xff]  ;;  %v909_v32 = vpack.c.bf16 %v178_v24, %v174_v23 }
  0x6e   :  { %v187_v29 = vld [vmem:[#allocation5 + $0x368] sm:$0xff]  ;;  %v189_v31 = vld [vmem:[#allocation5 + $0x378] sm:$0xff]  ;;  %374 = vmatprep.mubr.f32.mxu1 %v236_v19  ;;  %v973_v33 = vpack.c.bf16 %v180_v27, %v176_v25  ;;  %v182_v35 = vld [vmem:[#allocation5 + $0x340] sm:$0xff] }
  0x6f   :  { %894 = vmatpush1.bf16.msra.mxu0 %v893_v46  ;;  %v911_v34 = vpack.c.bf16 %v187_v29, %v183_v28  ;;  %v186_v36 = vld [vmem:[#allocation5 + $0x360] sm:$0xff]  ;;  %v184_v37 = vld [vmem:[#allocation5 + $0x350] sm:$0xff]  ;;  %v975_v38 = vpack.c.bf16 %v189_v31, %v185_v30  ;;  %v191_v40 = vld [vmem:[#allocation5 + $0x388] sm:$0xff] }
  0x70   :  { %958 = vmatpush1.bf16.msra.mxu1 %v957_v47  ;;  %896 = vmatprep.subr.bf16.mxu0 %v895_v48  ;;  %v188_v39 = vld [vmem:[#allocation5 + $0x370] sm:$0xff]  ;;  %v195_v41 = vld [vmem:[#allocation5 + $0x3a8] sm:$0xff]  ;;  %v193_v42 = vld [vmem:[#allocation5 + $0x398] sm:$0xff]  ;;  %v913_v44 = vpack.c.bf16 %v186_v36, %v182_v35 }
  0x71   :  { %960 = vmatprep.subr.bf16.mxu1 %v959_v52  ;;  %v197_v43 = vld [vmem:[#allocation5 + $0x3b8] sm:$0xff]  ;;  %v977_v45 = vpack.c.bf16 %v188_v39, %v184_v37  ;;  %v915_v46 = vpack.c.bf16 %v195_v41, %v191_v40  ;;  %v190_v47 = vld [vmem:[#allocation5 + $0x380] sm:$0xff]  ;;  %v192_v49 = vld [vmem:[#allocation5 + $0x390] sm:$0xff] }
  0x72   :  { %v194_v48 = vld [vmem:[#allocation5 + $0x3a0] sm:$0xff]  ;;  %v979_v50 = vpack.c.bf16 %v197_v43, %v193_v42  ;;  %v196_v51 = vld [vmem:[#allocation5 + $0x3b0] sm:$0xff]  ;;  %v199_v52 = vld [vmem:[#allocation5 + $0x3c8] sm:$0xff] }
  0x73   :  { %898 = vmatpush1.bf16.msra.mxu0 %v897_v58  ;;  %v203_v53 = vld [vmem:[#allocation5 + $0x3e8] sm:$0xff]  ;;  %v201_v54 = vld [vmem:[#allocation5 + $0x3d8] sm:$0xff]  ;;  %v917_v56 = vpack.c.bf16 %v194_v48, %v190_v47  ;;  %v981_v57 = vpack.c.bf16 %v196_v51, %v192_v49  ;;  %v200_v61 = vld [vmem:[#allocation5 + $0x3d0] sm:$0xff] }
  0x74   :  { %962 = vmatpush1.bf16.msra.mxu1 %v961_v59  ;;  %900 = vmatprep.subr.bf16.mxu0 %v899_v60  ;;  %v205_v55 = vld [vmem:[#allocation5 + $0x3f8] sm:$0xff]  ;;  %v919_v58 = vpack.c.bf16 %v203_v53, %v199_v52  ;;  %v198_v59 = vld [vmem:[#allocation5 + $0x3c0] sm:$0xff]  ;;  %v204_v63 = vld [vmem:[#allocation5 + $0x3f0] sm:$0xff] }
  0x75   :  { %964 = vmatprep.subr.bf16.mxu1 %v963_v0  ;;  %v202_v60 = vld [vmem:[#allocation5 + $0x3e0] sm:$0xff]  ;;  %v983_v62 = vpack.c.bf16 %v205_v55, %v201_v54  ;;  %v402_v1 = vld [vmem:[#allocation7 + $0x88] sm:$0xff]  ;;  %v985_v5 = vpack.c.bf16 %v204_v63, %v200_v61  ;;  %v403_v12 = vld [vmem:[#allocation7 + $0x90] sm:$0xff] }
  0x76   :  { %v401_v0 = vld [vmem:[#allocation7 + $0x80] sm:$0xff]  ;;  %v434_v3 = vld [vmem:[#allocation7 + $0x188] sm:$0xff]  ;;  %v921_v4 = vpack.c.bf16 %v202_v60, %v198_v59  ;;  %v435_v14 = vld [vmem:[#allocation7 + $0x190] sm:$0xff] }
  0x77   :  { %902 = vmatpush1.bf16.msra.mxu0 %v901_v6  ;;  %v433_v2 = vld [vmem:[#allocation7 + $0x180] sm:$0xff]  ;;  %v987_v6 = vpack.c.bf16 %v402_v1, %v401_v0  ;;  %v418_v11 = vld [vmem:[#allocation7 + $0x108] sm:$0xff]  ;;  %v436_v15 = vld [vmem:[#allocation7 + $0x198] sm:$0xff] }
  0x78   :  { %966 = vmatpush1.bf16.msra.mxu1 %v965_v8  ;;  %904 = vmatprep.subr.bf16.mxu0 %v903_v9  ;;  %v385_v7 = vld [vmem:[#allocation7] sm:$0xff]  ;;  %v386_v8 = vld [vmem:[#allocation7 + $0x8] sm:$0xff]  ;;  %v1019_v10 = vpack.c.bf16 %v434_v3, %v433_v2  ;;  %v1023_v23 = vpack.c.bf16 %v436_v15, %v435_v14  ;;  %v420_v24 = vld [vmem:[#allocation7 + $0x118] sm:$0xff] }
  0x79   :  { %968 = vmatprep.subr.bf16.mxu1 %v967_v13  ;;  %v417_v9 = vld [vmem:[#allocation7 + $0x100] sm:$0xff]  ;;  %v404_v13 = vld [vmem:[#allocation7 + $0x98] sm:$0xff]  ;;  %v989_v17 = vpack.c.bf16 %v386_v8, %v385_v7  ;;  %v438_v28 = vld [vmem:[#allocation7 + $0x1a8] sm:$0xff] }
  0x7a   :  { %v1021_v18 = vpack.c.bf16 %v418_v11, %v417_v9  ;;  %v991_v19 = vpack.c.bf16 %v404_v13, %v403_v12  ;;  %v405_v25 = vld [vmem:[#allocation7 + $0xa0] sm:$0xff]  ;;  %v422_v36 = vld [vmem:[#allocation7 + $0x128] sm:$0xff]  ;;  %v407_v37 = vld [vmem:[#allocation7 + $0xb0] sm:$0xff] }
  0x7b   :  { %906 = vmatpush1.bf16.msra.mxu0 %v905_v20  ;;  %v387_v20 = vld [vmem:[#allocation7 + $0x10] sm:$0xff]  ;;  %v437_v27 = vld [vmem:[#allocation7 + $0x1a0] sm:$0xff]  ;;  %v440_v40 = vld [vmem:[#allocation7 + $0x1b8] sm:$0xff] }
  0x7c   :  { %970 = vmatpush1.bf16.msra.mxu1 %v969_v21  ;;  %908 = vmatprep.subr.bf16.mxu0 %v907_v22  ;;  %v388_v21 = vld [vmem:[#allocation7 + $0x18] sm:$0xff]  ;;  %v419_v22 = vld [vmem:[#allocation7 + $0x110] sm:$0xff]  ;;  %v1027_v35 = vpack.c.bf16 %v438_v28, %v437_v27  ;;  %v409_v48 = vld [vmem:[#allocation7 + $0xc0] sm:$0xff] }
  0x7d   :  { %972 = vmatprep.subr.bf16.mxu1 %v971_v26  ;;  %v406_v26 = vld [vmem:[#allocation7 + $0xa8] sm:$0xff]  ;;  %v993_v29 = vpack.c.bf16 %v388_v21, %v387_v20  ;;  %v1025_v30 = vpack.c.bf16 %v420_v24, %v419_v22  ;;  %v439_v39 = vld [vmem:[#allocation7 + $0x1b0] sm:$0xff]  ;;  %v424_v47 = vld [vmem:[#allocation7 + $0x138] sm:$0xff] }
  0x7e   :  { %v995_v31 = vpack.c.bf16 %v406_v26, %v405_v25  ;;  %v391_v43 = vld [vmem:[#allocation7 + $0x30] sm:$0xff]  ;;  %v410_v49 = vld [vmem:[#allocation7 + $0xc8] sm:$0xff]  ;;  %v393_v55 = vld [vmem:[#allocation7 + $0x40] sm:$0xff] }
  0x7f   :  { %910 = vmatpush1.bf16.msra.mxu0 %v909_v32  ;;  %v389_v32 = vld [vmem:[#allocation7 + $0x20] sm:$0xff]  ;;  %v442_v51 = vld [vmem:[#allocation7 + $0x1c8] sm:$0xff]  ;;  %v1003_v54 = vpack.c.bf16 %v410_v49, %v409_v48  ;;  %v411_v60 = vld [vmem:[#allocation7 + $0xd0] sm:$0xff] }
  0x80   :  { %974 = vmatpush1.bf16.msra.mxu1 %v973_v33  ;;  %912 = vmatprep.subr.bf16.mxu0 %v911_v34  ;;  %v390_v33 = vld [vmem:[#allocation7 + $0x28] sm:$0xff]  ;;  %v421_v34 = vld [vmem:[#allocation7 + $0x120] sm:$0xff]  ;;  %v412_v61 = vld [vmem:[#allocation7 + $0xd8] sm:$0xff] }
  0x81   :  { %976 = vmatprep.subr.bf16.mxu1 %v975_v38  ;;  %v408_v38 = vld [vmem:[#allocation7 + $0xb8] sm:$0xff]  ;;  %v997_v41 = vpack.c.bf16 %v390_v33, %v389_v32  ;;  %v426_v59 = vld [vmem:[#allocation7 + $0x148] sm:$0xff]  ;;  %v1007_v2 = vpack.c.bf16 %v412_v61, %v411_v60  ;;  %v395_v3 = vld [vmem:[#allocation7 + $0x50] sm:$0xff]  ;;  %v1223_v60 = vmov 0.0|0.0  }
  0x82   :  { %v999_v42 = vpack.c.bf16 %v408_v38, %v407_v37  ;;  %v444_v63 = vld [vmem:[#allocation7 + $0x1d8] sm:$0xff]  ;;  %v413_v8 = vld [vmem:[#allocation7 + $0xe0] sm:$0xff]  ;;  %v414_v9 = vld [vmem:[#allocation7 + $0xe8] sm:$0xff] }
  0x83   :  { %914 = vmatpush1.bf16.msra.mxu0 %v913_v44  ;;  %v392_v44 = vld [vmem:[#allocation7 + $0x38] sm:$0xff]  ;;  %v446_v11 = vld [vmem:[#allocation7 + $0x1e8] sm:$0xff]  ;;  %v1011_v14 = vpack.c.bf16 %v414_v9, %v413_v8  ;;  %v447_v25 = vld [vmem:[#allocation7 + $0x1f0] sm:$0xff] }
  0x84   :  { %978 = vmatpush1.bf16.msra.mxu1 %v977_v45  ;;  %916 = vmatprep.subr.bf16.mxu0 %v915_v46  ;;  %v423_v45 = vld [vmem:[#allocation7 + $0x130] sm:$0xff]  ;;  %v1031_v46 = vpack.c.bf16 %v440_v40, %v439_v39  ;;  %v1001_v52 = vpack.c.bf16 %v392_v44, %v391_v43  ;;  %v428_v7 = vld [vmem:[#allocation7 + $0x158] sm:$0xff]  ;;  %v430_v21 = vld [vmem:[#allocation7 + $0x168] sm:$0xff] }
  0x85   :  { %980 = vmatprep.subr.bf16.mxu1 %v979_v50  ;;  %v441_v50 = vld [vmem:[#allocation7 + $0x1c0] sm:$0xff]  ;;  %v1033_v53 = vpack.c.bf16 %v424_v47, %v423_v45  ;;  %v416_v24 = vld [vmem:[#allocation7 + $0xf8] sm:$0xff]  ;;  %v399_v28 = vld [vmem:[#allocation7 + $0x70] sm:$0xff] }
  0x86   :  { %v448_v27 = vld [vmem:[#allocation7 + $0x1f8] sm:$0xff]  ;;  %v431_v32 = vld [vmem:[#allocation7 + $0x170] sm:$0xff]  ;;  %v635_v8 = vld [vmem:[#allocation8 + $0x48] sm:$0xff] }
  0x87   :  { %918 = vmatpush1.bf16.msra.mxu0 %v917_v56  ;;  %v394_v56 = vld [vmem:[#allocation7 + $0x48] sm:$0xff]  ;;  %v432_v33 = vld [vmem:[#allocation7 + $0x178] sm:$0xff]  ;;  %v628_v61 = vld [vmem:[#allocation8 + $0x10] sm:$0xff] }
  0x88   :  { %982 = vmatpush1.bf16.msra.mxu1 %v981_v57  ;;  %920 = vmatprep.subr.bf16.mxu0 %v919_v58  ;;  %v425_v57 = vld [vmem:[#allocation7 + $0x140] sm:$0xff]  ;;  %v1035_v58 = vpack.c.bf16 %v442_v51, %v441_v50  ;;  %v1005_v0 = vpack.c.bf16 %v394_v56, %v393_v55  ;;  %v206_v38 = vld [vmem:[%s1336_s2] sm:$0xf] }
  0x89   :  { %984 = vmatprep.subr.bf16.mxu1 %v983_v62  ;;  %v443_v62 = vld [vmem:[#allocation7 + $0x1d0] sm:$0xff]  ;;  %v1037_v1 = vpack.c.bf16 %v426_v59, %v425_v57  ;;  %v626_v57 = vld [vmem:[#allocation8] sm:$0xff] }
  0x8b   :  { %922 = vmatpush1.bf16.msra.mxu0 %v921_v4  ;;  %v396_v4 = vld [vmem:[#allocation7 + $0x58] sm:$0xff] }
  0x8c   :  { %986 = vmatpush1.bf16.msra.mxu1 %v985_v5  ;;  %988 = vmatprep.subr.bf16.mxu0 %v987_v6  ;;  %v427_v5 = vld [vmem:[#allocation7 + $0x150] sm:$0xff]  ;;  %v1039_v6 = vpack.c.bf16 %v444_v63, %v443_v62  ;;  %v1009_v12 = vpack.c.bf16 %v396_v4, %v395_v3  ;;  %v629_v62 = vld [vmem:[#allocation8 + $0x18] sm:$0xff]  ;;  %v630_v63 = vld [vmem:[#allocation8 + $0x20] sm:$0xff] }
  0x8d   :  { %1020 = vmatprep.subr.bf16.mxu1 %v1019_v10  ;;  %v445_v10 = vld [vmem:[#allocation7 + $0x1e0] sm:$0xff]  ;;  %v1041_v13 = vpack.c.bf16 %v428_v7, %v427_v5  ;;  %v632_v4 = vld [vmem:[#allocation8 + $0x30] sm:$0xff]  ;;  %v633_v5 = vld [vmem:[#allocation8 + $0x38] sm:$0xff] }
  0x8e   :  { %304 = vmatmul.mubr.f32.vlgmr.msra.gmra.mrb[0].mxu0 %v1310_v16  ;;  %v1043_v15 = vpack.c.bf16 %v446_v11, %v445_v10  ;;  %v634_v7 = vld [vmem:[#allocation8 + $0x40] sm:$0xff]  ;;  %v636_v10 = vld [vmem:[#allocation8 + $0x50] sm:$0xff]  ;;  %v637_v11 = vld [vmem:[#allocation8 + $0x58] sm:$0xff] }
  0x8f   :  { %375 = vmatmul.mubr.f32.vlgmr.msra.gmra.mrb[0].mxu1 %v1310_v16  ;;  %990 = vmatpush3.bf16.msra.mxu0 %v989_v17  ;;  %v1029_v16 = vpack.c.bf16 %v422_v36, %v421_v34  ;;  %v397_v17 = vld [vmem:[#allocation7 + $0x60] sm:$0xff]  ;;  %v1049_v34 = vpack.c.bf16 %v432_v33, %v431_v32  ;;  %v1064_v9 = vpack.c.bf16 %v635_v8, %v634_v7 }
  0x90   :  { %1022 = vmatpush3.bf16.msra.mxu1 %v1021_v18  ;;  %992 = vmatprep.subr.bf16.mxu0 %v991_v19  ;;  %v398_v18 = vld [vmem:[#allocation7 + $0x68] sm:$0xff]  ;;  %v429_v19 = vld [vmem:[#allocation7 + $0x160] sm:$0xff] }
  0x91   :  { %1024 = vmatprep.subr.bf16.mxu1 %v1023_v23  ;;  %v1013_v20 = vpack.c.bf16 %v398_v18, %v397_v17  ;;  %v1045_v22 = vpack.c.bf16 %v430_v21, %v429_v19  ;;  %v415_v23 = vld [vmem:[#allocation7 + $0xf0] sm:$0xff]  ;;  %v641_v18 = vld [vmem:[#allocation8 + $0x78] sm:$0xff] }
  0x92   :  { %v1015_v26 = vpack.c.bf16 %v416_v24, %v415_v23  ;;  %v640_v17 = vld [vmem:[#allocation8 + $0x70] sm:$0xff] }
  0x93   :  { %994 = vmatpush3.bf16.msra.mxu0 %v993_v29  ;;  %v400_v29 = vld [vmem:[#allocation7 + $0x78] sm:$0xff]  ;;  %v1073_v19 = vpack.c.bf16 %v641_v18, %v640_v17 }
  0x94   :  { %1026 = vmatpush3.bf16.msra.mxu1 %v1025_v30  ;;  %996 = vmatprep.subr.bf16.mxu0 %v995_v31  ;;  %v1047_v30 = vpack.c.bf16 %v448_v27, %v447_v25  ;;  %v1017_v31 = vpack.c.bf16 %v400_v29, %v399_v28 }
  0x95   :  { %1028 = vmatprep.subr.bf16.mxu1 %v1027_v35  ;;  %v208_v35 = vlaneseq }
  0x97   :  { %998 = vmatpush3.bf16.msra.mxu0 %v997_v41  ;;  %v209_v36 = vshrl.u32 %v208_v35, 7 }
  0x98   :  { %1030 = vmatpush3.bf16.msra.mxu1 %v1029_v16  ;;  %1000 = vmatprep.subr.bf16.mxu0 %v999_v42 }
  0x99   :  { %1032 = vmatprep.subr.bf16.mxu1 %v1031_v46  ;;  %v210_v37 = vsub.s32 0, %v209_v36  ;;  %v218_v39 = vsub.s32 2, %v209_v36  ;;  %v214_v40 = vsub.s32 1, %v209_v36  ;;  %v222_v41 = vsub.s32 3, %v209_v36 }
  0x9b   :  { %1002 = vmatpush3.bf16.msra.mxu0 %v1001_v52  ;;  %v211_v16 = vrot.slane %v206_v38, %v210_v37  ;;  %v219_v42 = vrot.slane %v206_v38, %v218_v39  ;;  %v215_v43 = vrot.slane %v206_v38, %v214_v40  ;;  %v223_v44 = vrot.slane %v206_v38, %v222_v41 }
  0x9c   :  { %1034 = vmatpush3.bf16.msra.mxu1 %v1033_v53  ;;  %1004 = vmatprep.subr.bf16.mxu0 %v1003_v54 }
  0x9d   :  { %1036 = vmatprep.subr.bf16.mxu1 %v1035_v58  ;;  %v627_v58 = vld [vmem:[#allocation8 + $0x8] sm:$0xff] }
  0x9e   :  { %v1052_v59 = vpack.c.bf16 %v627_v58, %v626_v57 }
  0x9f   :  { %1006 = vmatpush3.bf16.msra.mxu0 %v1005_v0  ;;  %v1055_v0 = vpack.c.bf16 %v629_v62, %v628_v61 }
  0xa0   :  { %1038 = vmatpush3.bf16.msra.mxu1 %v1037_v1  ;;  %1008 = vmatprep.subr.bf16.mxu0 %v1007_v2  ;;  %v631_v1 = vld [vmem:[#allocation8 + $0x28] sm:$0xff]  ;;  %v1225_v2 = vmov 0.0  }
  0xa1   :  { %1040 = vmatprep.subr.bf16.mxu1 %v1039_v6  ;;  %v1058_v3 = vpack.c.bf16 %v631_v1, %v630_v63  ;;  %v1061_v6 = vpack.c.bf16 %v633_v5, %v632_v4 }
  0xa3   :  { %1010 = vmatpush3.bf16.msra.mxu0 %v1009_v12  ;;  %v1067_v12 = vpack.c.bf16 %v637_v11, %v636_v10 }
  0xa4   :  { %1042 = vmatpush3.bf16.msra.mxu1 %v1041_v13  ;;  %1012 = vmatprep.subr.bf16.mxu0 %v1011_v14  ;;  %v638_v13 = vld [vmem:[#allocation8 + $0x60] sm:$0xff]  ;;  %v639_v14 = vld [vmem:[#allocation8 + $0x68] sm:$0xff] }
  0xa5   :  { %1044 = vmatprep.subr.bf16.mxu1 %v1043_v15  ;;  %v1070_v15 = vpack.c.bf16 %v639_v14, %v638_v13 }
  0xa7   :  { %1014 = vmatpush3.bf16.msra.mxu0 %v1013_v20 }
  0xa8   :  { %1046 = vmatpush3.bf16.msra.mxu1 %v1045_v22  ;;  %1016 = vmatprep.subr.bf16.mxu0 %v1015_v26  ;;  %v736_v22 = vld [vmem:[%s1338_s4] ss:$0 sm:$0xff]  ;;  %s1226_s4 = smov [#allocation10]  }
  0xa9   :  { %1048 = vmatprep.subr.bf16.mxu1 %v1047_v30  ;;  %s724_s23 = sshll.u32 %s1226_s4, 4  ;;  %s725_s23 = int_to_ptr.vmem [resolvable:$true] %s724_s23 }
  0xaa   :  { %s1185_s24 = scalar_lea.vmem %s725_s23, 32  ;;  %p1190_p5 = scmp.lt.s32.totalorder %s725_s23, %s725_s23 }
  0xab   :  { %1018 = vmatpush3.bf16.msra.mxu0 %v1017_v31  ;;  %p1186_p4 = scmp.ne.s32.totalorder %s725_s23, %s1185_s24  ;;  %p1191_p6 = scmp.lt.s32.totalorder %s1185_s24, %s1185_s24 }
  0xac   :  { %1050 = vmatpush3.bf16.msra.mxu1 %v1049_v34  ;;  %1051 = vmatprep.subr.bf16.mxu0 %v1223_v60 }
  0xad   :  { %p1192_p7 = por %p1191_p6, %p1190_p5 }
  0xaf   :  { %p1193_p8 = pnand %p1192_p7, %p1186_p4 }
 0x161   :  { %v305_v45 = vpop.f32.mrb[0].mxu0 }
 0x162   :  { %v306_v46 = vadd.f32 %v305_v45, %v211_v16  ;;  %v376_v47 = vpop.f32.mrb[0].mxu1  ;;  %v307_v48 = vpop.f32.mrb[1].mxu0 }
 0x163   :  { %v377_v49 = vadd.f32 %v376_v47, %v219_v42  ;;  %v308_v50 = vadd.f32 %v307_v48, %v215_v43  ;;  %v378_v51 = vpop.f32.mrb[1].mxu1 }
 0x164   :  { %v379_v52 = vadd.f32 %v378_v51, %v223_v44  ;;  %v381_v55 = vmax.f32 %v306_v46, 0.0 }
 0x165   :  { %v383_v53 = vmax.f32 %v377_v49, 0.0  ;;  %v382_v54 = vmax.f32 %v308_v50, 0.0 }
 0x166   :  { %v384_v56 = vmax.f32 %v379_v52, 0.0 }
 0x167   :  { %520 = vmatprep.mubr.f32.mxu0 %v382_v54 }
 0x168   :  { %590 = vmatprep.mubr.f32.mxu1 %v384_v56  ;;  %521 = vmatmul.mubr.f32.vlgmr.msra.gmra.mrb[2].mxu0 %v381_v55 }
 0x169   :  { %591 = vmatmul.mubr.f32.vlgmr.msra.gmra.mrb[2].mxu1 %v383_v53  ;;  %1053 = vmatpush3.bf16.msra.mxu0 %v1052_v59 }
 0x16a   :  { %1054 = vmatprep.subr.bf16.mxu0 %v1223_v60  ;;  %856 = vmatprep.mubr.msk.f32.mxu0 %vm1224_vm0, %v1225_v2 }
 0x16d   :  { %1056 = vmatpush3.bf16.msra.mxu0 %v1055_v0 }
 0x16e   :  { %1057 = vmatprep.subr.bf16.mxu0 %v1223_v60 }
 0x171   :  { %1059 = vmatpush3.bf16.msra.mxu0 %v1058_v3 }
 0x172   :  { %1060 = vmatprep.subr.bf16.mxu0 %v1223_v60 }
 0x175   :  { %1062 = vmatpush3.bf16.msra.mxu0 %v1061_v6 }
 0x176   :  { %1063 = vmatprep.subr.bf16.mxu0 %v1223_v60 }
 0x179   :  { %1065 = vmatpush3.bf16.msra.mxu0 %v1064_v9 }
 0x17a   :  { %1066 = vmatprep.subr.bf16.mxu0 %v1223_v60 }
 0x17d   :  { %1068 = vmatpush3.bf16.msra.mxu0 %v1067_v12 }
 0x17e   :  { %1069 = vmatprep.subr.bf16.mxu0 %v1223_v60 }
 0x181   :  { %1071 = vmatpush3.bf16.msra.mxu0 %v1070_v15 }
 0x182   :  { %1072 = vmatprep.subr.bf16.mxu0 %v1223_v60 }
 0x185   :  { %1074 = vmatpush3.bf16.msra.mxu0 %v1073_v19 }
 0x23b   :  { %v769_v20 = vpop.f32.mrb[2].mxu0 }
 0x23c   :  { %v804_v21 = vpop.f32.mrb[2].mxu1  ;;  %v770_v23 = vpop.f32.mrb[3].mxu0 }
 0x23d   :  { %v771_v24 = vadd.f32 %v770_v23, %v769_v20  ;;  %v805_v25 = vpop.f32.mrb[3].mxu1 }
 0x23e   :  { %v806_v26 = vadd.f32 %v805_v25, %v804_v21 }
 0x23f   :  { %v523_v27 = vadd.f32 %v771_v24, %v736_v22 }
 0x241   :  { %v593_v28 = vadd.f32 %v806_v26, %v523_v27 }
 0x243   :  { %v597_v29 = vand.u32 2147483647, %v593_v28  ;;  %v596_v40 = vmax.f32 %v593_v28, 0.0 }
 0x245   :  { %v598_v30 = vsub.f32 0.0, %v597_v29 }
 0x247   :  { %v599_v31 = vmul.f32 1.442695, %v598_v30 }
 0x249   :  { %1087 = vpow2.f32 %v599_v31 }
 0x253   :  { %v1088_v32 = vpop.eup %1087 }
 0x254   :  { %v601_v33 = vadd.f32 1.0, %v1088_v32  ;;  %v604_v34 = vmul.f32 -0.5, %v1088_v32  ;;  %v607_v36 = vand.u32 2147483647, %v1088_v32 }
 0x256   :  { %1089 = vlog2.f32 %v601_v33  ;;  %v605_v35 = vadd.f32 1.0, %v604_v34  ;;  %vm608_vm1 = vcmp.lt.f32.partialorder %v607_v36, 0.0004427343 }
 0x258   :  { %v606_v39 = vmul.f32 %v1088_v32, %v605_v35 }
 0x260   :  { %v1090_v37 = vpop.eup %1089 }
 0x261   :  { %v603_v38 = vmul.f32 0.6931472, %v1090_v37 }
 0x263   :  { %v609_v41 = vsel %vm608_vm1, %v606_v39, %v603_v38 }
 0x264   :  { %v610_v16 = vadd.f32 %v609_v41, %v596_v40 }
 0x266   :  { %v612_v42 = vand.u32 2147483647, %v610_v16  ;;  %v611_v53 = vmax.f32 %v610_v16, 0.0 }
 0x268   :  { %v613_v43 = vsub.f32 0.0, %v612_v42 }
 0x26a   :  { %v614_v44 = vmul.f32 1.442695, %v613_v43 }
 0x26c   :  { %1091 = vpow2.f32 %v614_v44 }
 0x276   :  { %v1092_v45 = vpop.eup %1091 }
 0x277   :  { %v616_v46 = vadd.f32 1.0, %v1092_v45  ;;  %v619_v47 = vmul.f32 -0.5, %v1092_v45  ;;  %v622_v49 = vand.u32 2147483647, %v1092_v45 }
 0x279   :  { %1093 = vlog2.f32 %v616_v46  ;;  %v620_v48 = vadd.f32 1.0, %v619_v47  ;;  %vm623_vm2 = vcmp.lt.f32.partialorder %v622_v49, 0.0004427343 }
 0x27b   :  { %v621_v52 = vmul.f32 %v1092_v45, %v620_v48 }
 0x283   :  { %v1094_v50 = vpop.eup %1093 }
 0x284   :  { %v618_v51 = vmul.f32 0.6931472, %v1094_v50 }
 0x286   :  { %v624_v54 = vsel %vm623_vm2, %v621_v52, %v618_v51 }
 0x287   :  { %v625_v55 = vadd.f32 %v624_v54, %v611_v53 }
 0x289   :  { %857 = vmatmul.mubr.f32.vlgmr.msra.gmra.mrb[4].mxu0 %v625_v55 }
 0x35c   :  { %v708_v56 = vpop.f32.mrb[4].mxu0 }
 0x35d   :  { %1095 = vrcp.f32 %v708_v56  ;;  %v858_v57 = vpop.f32.mrb[5].mxu0 }
 0x367   :  { %v1096_v58 = vpop.eup %1095 }
 0x368   :  { %v713_v59 = vmul.f32 %v1096_v58, %v708_v56 }
 0x36a   :  { %v714_v60 = vsub.f32 2.0, %v713_v59 }
 0x36c   :  { %v715_v61 = vmul.f32 %v1096_v58, %v714_v60 }
 0x36e   :  { %v716_v62 = vmul.f32 %v715_v61, %v625_v55 }
 0x370   :  { %717 = vst [vmem:[#allocation10] sm:$0x3] %v716_v62 }
 0x371   :  { %1196 = shalt.err (!%p1193_p8)
}
 0x372   :  { %s1197_s27 = scalar_lea.hbm %s1340_s6, 32 }
 0x373   :  { %p1198_p9 = scmp.ne.s32.totalorder %s1340_s6, %s1197_s27  ;;  %p1201_p10 = scmp.lt.u32.totalorder %s1197_s27, %s1340_s6 }
 0x375   :  { %p1203_p11 = pnand %p1201_p10, %p1198_p9 }
 0x377   :  { %1206 = shalt.err (!%p1203_p11)
}
 0x378   :  { %727 = dma.vmem_to_hbm [thread:$0]  %s725_s23, 32, %s1340_s6, [#allocation4]  }
 0x379   :  { %1213 = dma.done.wait [#allocation4], 32  }
 0x37a   :  { %1214 = vsyncadd [#allocation4], 4294967264 }
 0x37b   :  { %731 = vsyncpa [#allocation3], 1 }
 0x37c   :  { %732 = vsyncpa [#allocation6], 1 }
 0x37d   :  { %733 = vsyncpa [#allocation9], 1 }
 0x37e   :  { %734 = vsyncpa [#allocation4], 1 }

</bundles_post_ra>
